<compile_context>
chip_gen: v6e
topology: v6e:2x2x1
jax: 0.10.0
libtpu: 0.0.40
codegen_flags: <defaults>
</compile_context>

<pallas_src>
import functools

import jax
import jax.numpy as jnp
from jax.experimental import pallas as pl
from jax.experimental.pallas import tpu as pltpu


def _round_up(x, m):
    return ((x + m - 1) // m) * m


def _masked_bce(x_ref, t_ref, total_rows):
    """Per-element BCEWithLogits loss, zeroed at unobserved / out-of-range rows."""
    x = x_ref[...].astype(jnp.float32)            # logits, any input dtype
    t = t_ref[...].astype(jnp.float32)            # ratings, -1 = unobserved
    rows = x.shape[0]
    row_ids = (pl.program_id(0) * rows
               + jax.lax.broadcasted_iota(jnp.int32, x.shape, 0))
    mask = (t != jnp.float32(-1.0)) & (row_ids < total_rows)
    # Numerically stable BCEWithLogitsLoss (reduce=False):
    #   loss = max(x, 0) - x * t + log(1 + exp(-|x|))
    per_elem = (jnp.maximum(x, 0.0) - x * t
                + jnp.log1p(jnp.exp(-jnp.abs(x))))
    return jnp.where(mask, per_elem, jnp.float32(0.0)), mask


def _kernel_elementwise(x_ref, t_ref, loss_ref, cnt_ref, sum_ref, *, total_rows):
    masked, mask = _masked_bce(x_ref, t_ref, total_rows)
    loss_ref[...] = masked
    cnt_ref[0, 0] = jnp.sum(mask.astype(jnp.int32))
    sum_ref[0, 0] = jnp.sum(masked)


def _kernel_sums_only(x_ref, t_ref, cnt_ref, sum_ref, *, total_rows):
    masked, mask = _masked_bce(x_ref, t_ref, total_rows)
    cnt_ref[0, 0] = jnp.sum(mask.astype(jnp.int32))
    sum_ref[0, 0] = jnp.sum(masked)


def _choose_tile_rows(B, N, bytes_per_elem, target_tile_bytes):
    bytes_per_row = max(1, bytes_per_elem) * N
    rows = (target_tile_bytes // bytes_per_row) // 32 * 32
    rows = max(32, rows)
    if rows >= B:
        return B        # single full-extent block (exempt from (8,128) rule)
    return rows         # multiple of 32: valid sublane tiling for f32/bf16/int8


def reconstruction_loss(model_output, target, *, return_elementwise=True,
                        target_tile_bytes=(3 << 20) // 2):
    """Masked BCE-with-logits.

    Returns (per_element_loss_or_None, loss_sum, nb_observed_targets).
    `target` must use -1 exactly as the "unobserved" sentinel (exact in
    f32 / bf16 / int8).
    """
    assert model_output.shape == target.shape
    B, N = model_output.shape
    x_bytes = jnp.dtype(model_output.dtype).itemsize
    t_bytes = jnp.dtype(target.dtype).itemsize
    out_bytes = 4 if return_elementwise else 0

    tile_rows = _choose_tile_rows(B, N, x_bytes + t_bytes + out_bytes,
                                  target_tile_bytes)
    grid_len = pl.cdiv(B, tile_rows)

    # Deliberate scoped-VMEM budget: double-buffered streams (f32 upper bound)
    # plus slack; stays well under v5e's 16 MiB default and v7x's 64 MiB
    # physical per-TC.
    n_lanes = _round_up(N, 128)
    rows_eff = _round_up(tile_rows, 32)
    n_streams = 3 if return_elementwise else 2
    vmem_limit = n_streams * 2 * rows_eff * n_lanes * 4 + (4 << 20)
    vmem_limit = min(max(vmem_limit, 16 << 20), 48 << 20)

    cost = pl.CostEstimate(
        flops=5 * B * N,
        transcendentals=2 * B * N,
        bytes_accessed=B * N * (x_bytes + t_bytes + out_bytes) + grid_len * 8,
    )

    in_specs = [pl.BlockSpec((tile_rows, N), lambda i: (i, 0)),
                pl.BlockSpec((tile_rows, N), lambda i: (i, 0))]

    def smem_spec():
        return pl.BlockSpec((1, 1), lambda i: (i, 0), memory_space=pltpu.SMEM)

    cnt_shape = jax.ShapeDtypeStruct((grid_len, 1), jnp.int32)
    sum_shape = jax.ShapeDtypeStruct((grid_len, 1), jnp.float32)

    compiler_params = pltpu.CompilerParams(
        # No cross-step carried state (per-block partials indexed by
        # program_id), so the grid axis is safely parallel.
        # TODO(synk): on v7x, consider pltpu.CORE_PARALLEL / pl.core_map to
        # guarantee both TensorCores stream their own share of the rows.
        dimension_semantics=("parallel",),
        vmem_limit_bytes=vmem_limit,
    )

    if return_elementwise:
        kernel = functools.partial(_kernel_elementwise, total_rows=B)
        loss_full, cnt_partial, sum_partial = pl.pallas_call(
            kernel,
            out_shape=(jax.ShapeDtypeStruct((B, N), jnp.float32),
                       cnt_shape, sum_shape),
            grid_spec=pltpu.PrefetchScalarGridSpec(
                num_scalar_prefetch=0,
                grid=(grid_len,),
                in_specs=in_specs,
                out_specs=(pl.BlockSpec((tile_rows, N), lambda i: (i, 0)),
                           smem_spec(), smem_spec()),
            ),
            compiler_params=compiler_params,
            cost_estimate=cost,
        )(model_output, target)
    else:
        kernel = functools.partial(_kernel_sums_only, total_rows=B)
        cnt_partial, sum_partial = pl.pallas_call(
            kernel,
            out_shape=(cnt_shape, sum_shape),
            grid_spec=pltpu.PrefetchScalarGridSpec(
                num_scalar_prefetch=0,
                grid=(grid_len,),
                in_specs=in_specs,
                out_specs=(smem_spec(), smem_spec()),
            ),
            compiler_params=compiler_params,
            cost_estimate=cost,
        )(model_output, target)
        loss_full = None

    nb_observed = jnp.sum(cnt_partial)
    loss_sum = jnp.sum(sum_partial)
    return loss_full, loss_sum, nb_observed


def _reference(model_output, target):
    x = model_output.astype(jnp.float32)
    t = target.astype(jnp.float32)
    mask = t != jnp.float32(-1.0)
    per = jnp.maximum(x, 0.0) - x * t + jnp.log1p(jnp.exp(-jnp.abs(x)))
    per = jnp.where(mask, per, jnp.float32(0.0))
    return per, jnp.sum(per), jnp.sum(mask)


if __name__ == "__main__":
    key = jax.random.PRNGKey(0)
    k1, k2, k3, k4 = jax.random.split(key, 4)

    # --- Case 1: narrow native dtypes (bf16 logits, int8 targets), ragged
    #             (non 8/128-aligned) shapes, single full-extent block. ---
    B, N = 12, 300
    model_output = jax.random.normal(k1, (B, N), dtype=jnp.float32).astype(jnp.bfloat16)
    ratings = jax.random.bernoulli(k2, 0.5, (B, N))
    observed = jax.random.bernoulli(k3, 0.5, (B, N))
    target = jnp.where(observed, ratings.astype(jnp.int8), jnp.int8(-1))

    loss, loss_sum, nb_obs = reconstruction_loss(model_output, target)
    loss, loss_sum, nb_obs = jax.block_until_ready((loss, loss_sum, nb_obs))

    ref_loss, ref_sum, ref_cnt = _reference(model_output, target)
    assert loss.shape == (B, N), loss.shape
    assert int(nb_obs) == int(ref_cnt), (nb_obs, ref_cnt)
    assert jnp.allclose(loss, ref_loss, atol=1e-5, rtol=1e-5)
    assert jnp.allclose(loss_sum, ref_sum, rtol=1e-5, atol=1e-3)

    # --- Case 2: f32 inputs, multi-block grid with ragged last row-block,
    #             sums-only path (no per-element loss written to HBM). ---
    B2, N2 = 200, 384
    x2 = jax.random.normal(k4, (B2, N2), dtype=jnp.float32)
    obs2 = jax.random.bernoulli(k2, 0.7, (B2, N2))
    t2 = jnp.where(obs2,
                   jax.random.bernoulli(k3, 0.5, (B2, N2)).astype(jnp.float32),
                   jnp.float32(-1.0))

    _, loss_sum2, nb_obs2 = reconstruction_loss(
        x2, t2, return_elementwise=False, target_tile_bytes=32 * 1024)
    loss_sum2, nb_obs2 = jax.block_until_ready((loss_sum2, nb_obs2))

    _, ref_sum2, ref_cnt2 = _reference(x2, t2)
    assert int(nb_obs2) == int(ref_cnt2), (nb_obs2, ref_cnt2)
    assert jnp.allclose(loss_sum2, ref_sum2, rtol=1e-4, atol=1e-2)

    print("KERNEL_OK")
</pallas_src>

<mosaic_0001>
module attributes {stable_mosaic.version = 11 : i64} {
  func.func @_kernel_elementwise(%arg0: i32, %arg1: memref<12x300xbf16, #tpu.memory_space<vmem>>, %arg2: memref<12x300xi8, #tpu.memory_space<vmem>>, %arg3: memref<12x300xf32, #tpu.memory_space<vmem>>, %arg4: memref<1x1xi32, #tpu.memory_space<smem>>, %arg5: memref<1x1xf32, #tpu.memory_space<smem>>) attributes {dimension_semantics = [#tpu.dimension_semantics<parallel>], iteration_bounds = array<i64: 1>, scalar_prefetch = 0 : i64, scratch_operands = 0 : i64, tpu.core_type = #tpu.core_type<tc>, window_params = [{transform_indices = @transform_0, window_bounds = array<i64: 12, 300>}, {transform_indices = @transform_1, window_bounds = array<i64: 12, 300>}, {transform_indices = @transform_2, window_bounds = array<i64: 12, 300>}, {transform_indices = @transform_3, window_bounds = array<i64: 1, 1>}, {transform_indices = @transform_4, window_bounds = array<i64: 1, 1>}]} {
    %c0 = arith.constant 0 : index
    %c0_0 = arith.constant 0 : index
    %0 = vector.load %arg1[%c0, %c0_0] : memref<12x300xbf16, #tpu.memory_space<vmem>>, vector<12x300xbf16>
    %1 = arith.extf %0 : vector<12x300xbf16> to vector<12x300xf32>
    %c0_1 = arith.constant 0 : index
    %c0_2 = arith.constant 0 : index
    %2 = vector.load %arg2[%c0_1, %c0_2] : memref<12x300xi8, #tpu.memory_space<vmem>>, vector<12x300xi8>
    %3 = arith.sitofp %2 : vector<12x300xi8> to vector<12x300xf32>
    %c12_i32 = arith.constant 12 : i32
    %4 = arith.muli %arg0, %c12_i32 : i32
    %5 = tpu.iota {dimensions = array<i32: 0>} : vector<12x300xi32>
    %6 = vector.broadcast %4 : i32 to vector<12x300xi32>
    %7 = arith.addi %6, %5 : vector<12x300xi32>
    %cst = arith.constant -1.000000e+00 : f32
    %8 = vector.broadcast %cst : f32 to vector<12x300xf32>
    %9 = arith.cmpf one, %3, %8 : vector<12x300xf32>
    %c12_i32_3 = arith.constant 12 : i32
    %10 = vector.broadcast %c12_i32_3 : i32 to vector<12x300xi32>
    %11 = arith.cmpi slt, %7, %10 : vector<12x300xi32>
    %12 = arith.andi %9, %11 : vector<12x300xi1>
    %cst_4 = arith.constant 0.000000e+00 : f32
    %13 = vector.broadcast %cst_4 : f32 to vector<12x300xf32>
    %14 = arith.maximumf %1, %13 : vector<12x300xf32>
    %15 = arith.mulf %1, %3 : vector<12x300xf32>
    %16 = arith.subf %14, %15 : vector<12x300xf32>
    %17 = math.absf %1 : vector<12x300xf32>
    %cst_5 = arith.constant 0.000000e+00 : f32
    %18 = vector.broadcast %cst_5 : f32 to vector<12x300xf32>
    %19 = arith.subf %18, %17 : vector<12x300xf32>
    %20 = math.exp %19 : vector<12x300xf32>
    %21 = math.log1p %20 : vector<12x300xf32>
    %22 = arith.addf %16, %21 : vector<12x300xf32>
    %cst_6 = arith.constant 0.000000e+00 : f32
    %23 = vector.broadcast %cst_6 : f32 to vector<12x300xf32>
    %24 = arith.select %12, %22, %23 : vector<12x300xi1>, vector<12x300xf32>
    %c0_7 = arith.constant 0 : index
    %c0_8 = arith.constant 0 : index
    %25 = vector.load %arg3[%c0_7, %c0_8] : memref<12x300xf32, #tpu.memory_space<vmem>>, vector<12x300xf32>
    tpu.vector_store %arg3[%c0_7, %c0_8], %24 {strides = array<i32>} : memref<12x300xf32, #tpu.memory_space<vmem>>, vector<12x300xf32>,
    %26 = arith.extui %12 : vector<12x300xi1> to vector<12x300xi32>
    %27 = vector.shape_cast %26 : vector<12x300xi32> to vector<1x12x300xi32>
    %cst_9 = arith.constant dense<0> : vector<1xi32>
    %28 = vector.multi_reduction <add>, %27, %cst_9 [1, 2] : vector<1x12x300xi32> to vector<1xi32>
    %29 = vector.shape_cast %28 : vector<1xi32> to vector<1x1x1xi32>
    %30 = vector.extract %29[0, 0, 0] : i32 from vector<1x1x1xi32>
    %c0_10 = arith.constant 0 : index
    %c0_11 = arith.constant 0 : index
    %31 = memref.load %arg4[%c0_10, %c0_11] : memref<1x1xi32, #tpu.memory_space<smem>>
    memref.store %30, %arg4[%c0_10, %c0_11] : memref<1x1xi32, #tpu.memory_space<smem>>
    %32 = vector.shape_cast %24 : vector<12x300xf32> to vector<1x12x300xf32>
    %cst_12 = arith.constant dense<0.000000e+00> : vector<1xf32>
    %33 = vector.multi_reduction <add>, %32, %cst_12 [1, 2] : vector<1x12x300xf32> to vector<1xf32>
    %34 = vector.shape_cast %33 : vector<1xf32> to vector<1x1x1xf32>
    %35 = vector.extract %34[0, 0, 0] : f32 from vector<1x1x1xf32>
    %c0_13 = arith.constant 0 : index
    %c0_14 = arith.constant 0 : index
    %36 = memref.load %arg5[%c0_13, %c0_14] : memref<1x1xf32, #tpu.memory_space<smem>>
    memref.store %35, %arg5[%c0_13, %c0_14] : memref<1x1xf32, #tpu.memory_space<smem>>
    return
  }
  func.func @transform_0(%arg0: i32) -> (i32, i32) {
    %c0_i32 = arith.constant 0 : i32
    %c0_i32_0 = arith.constant 0 : i32
    return %arg0, %c0_i32 : i32, i32
  }
  func.func @transform_1(%arg0: i32) -> (i32, i32) {
    %c0_i32 = arith.constant 0 : i32
    %c0_i32_0 = arith.constant 0 : i32
    return %arg0, %c0_i32 : i32, i32
  }
  func.func @transform_2(%arg0: i32) -> (i32, i32) {
    %c0_i32 = arith.constant 0 : i32
    %c0_i32_0 = arith.constant 0 : i32
    return %arg0, %c0_i32 : i32, i32
  }
  func.func @transform_3(%arg0: i32) -> (i32, i32) {
    %c0_i32 = arith.constant 0 : i32
    %c0_i32_0 = arith.constant 0 : i32
    return %arg0, %c0_i32 : i32, i32
  }
  func.func @transform_4(%arg0: i32) -> (i32, i32) {
    %c0_i32 = arith.constant 0 : i32
    %c0_i32_0 = arith.constant 0 : i32
    return %arg0, %c0_i32 : i32, i32
  }
}

</mosaic_0001>

<bundles_post_ra>
// kernel: tpu_custom_call.1
= control target key start
LH: loop header
LB: loop body
LE: loop exit
PB: predicated region body
PF: predicated region fallthrough
CT: control target
= control target key end

     0   :  { %10 = vsyncpa [#allocation3], 0  ;;  %s623_s0 = inlined_call_operand.hbm [shape: bf16[12,300], index: 0, kind: input, shape index: {}]   ;;  %s624_s1 = inlined_call_operand.hbm [shape: s8[12,300], index: 1, kind: input, shape index: {}]   ;;  %s625_s2 = inlined_call_operand.hbm [shape: f32[12,300], index: 2, kind: output, shape index: {0}]   ;;  %s626_s3 = inlined_call_operand.hbm [shape: s32[1,1], index: 3, kind: output, shape index: {1}]   ;;  %s627_s4 = inlined_call_operand.hbm [shape: f32[1,1], index: 4, kind: output, shape index: {2}]  }
   0x1   :  { %11 = vsyncpa [#allocation7], 0 }
   0x2   :  { %12 = vsyncpa [#allocation4], 0 }
   0x3   :  { %13 = vsyncpa [#allocation5], 0 }
   0x4   :  { %14 = vsyncpa [#allocation11], 0  ;;  %s432_s15 = smov [#allocation2]  }
   0x5   :  { %s20_s16 = sshll.u32 %s432_s15, 4  ;;  %s21_s16 = int_to_ptr.vmem [resolvable:$true] %s20_s16 }
   0x6   :  { %s354_s17 = scalar_lea.vmem %s21_s16, 384  ;;  %p359_p1 = scmp.lt.s32.totalorder %s21_s16, %s21_s16 }
   0x7   :  { %p355_p0 = scmp.ne.s32.totalorder %s21_s16, %s354_s17  ;;  %p360_p2 = scmp.lt.s32.totalorder %s354_s17, %s354_s17 }
   0x9   :  { %p361_p3 = por %p360_p2, %p359_p1 }
   0xb   :  { %p362_p4 = pnand %p361_p3, %p355_p0 }
   0xd   :  { %365 = shalt.err (!%p362_p4)
}
   0xe   :  { %s433_s18 = smov 192   ;;  %s434_s19 = smov 12  }
   0xf   :  { %26 = dma.hbm_to_vmem [thread:$0]  %s623_s0, 384, %s21_s16, [#allocation3], %s433_s18, %s433_s18, %s434_s19  }
  0x10   :  { %s435_s22 = smov [#allocation6]  }
  0x11   :  { %s32_s23 = sshll.u32 %s435_s22, 4  ;;  %s33_s23 = int_to_ptr.vmem [resolvable:$true] %s32_s23 }
  0x12   :  { %s374_s24 = scalar_lea.vmem %s33_s23, 192  ;;  %p379_p6 = scmp.lt.s32.totalorder %s33_s23, %s33_s23 }
  0x13   :  { %p375_p5 = scmp.ne.s32.totalorder %s33_s23, %s374_s24  ;;  %p380_p7 = scmp.lt.s32.totalorder %s374_s24, %s374_s24 }
  0x15   :  { %p381_p8 = por %p380_p7, %p379_p6 }
  0x17   :  { %p382_p9 = pnand %p381_p8, %p375_p5 }
  0x19   :  { %385 = shalt.err (!%p382_p9)
}
  0x1a   :  { %s436_s25 = smov 96   ;;  %s437_s26 = smov 6  }
  0x1b   :  { %38 = dma.hbm_to_vmem [thread:$0]  %s624_s1, 192, %s33_s23, [#allocation7], %s436_s25, %s436_s25, %s437_s26  }
  0x1c   :  { %422 = dma.done.wait [#allocation3], 384  }
  0x1d   :  { %423 = vsyncadd [#allocation3], 4294966912 }
  0x1e   :  { %424 = dma.done.wait [#allocation7], 192  }
  0x1f   :  { %425 = vsyncadd [#allocation7], 4294967104  ;;  %v70_v0 = vlaneseq  ;;  %vm200_vm0 = vcmask 359424   ;;  %v55_v2 = vld [vmem:[#allocation6] sm:$0x3f]  ;;  %v45_v5 = vld [vmem:[#allocation2] sm:$0xff] }
  0x20   :  { %v56_v3 = vld [vmem:[#allocation6 + $0x6] sm:$0x15]  ;;  %v57_v6 = vunpack.c.0.s8 %v55_v2  ;;  %v58_v7 = vunpack.c.1.s8 %v55_v2  ;;  %v59_v8 = vunpack.c.2.s8 %v55_v2  ;;  %vm213_vm1 = vcmask 1043456   ;;  %v46_v17 = vld [vmem:[#allocation2 + $0x8] sm:$0xf]  ;;  %s439_s0 = smov [#allocation8]  }
  0x21   :  { %v71_v1 = vshrl.u32 %v70_v0, 7  ;;  %v60_v9 = vunpack.c.0.s8 %v56_v3  ;;  %v61_v10 = vunpack.c.1.s8 %v56_v3  ;;  %v62_v11 = vunpack.c.2.s8 %v56_v3  ;;  %v47_v44 = vld [vmem:[#allocation2 + $0xc] sm:$0x33]  ;;  %v48_v47 = vld [vmem:[#allocation2 + $0x14] sm:$0x3]  ;;  %s268_s1 = sshll.u32 %s439_s0, 4  ;;  %s269_s1 = int_to_ptr.vmem [resolvable:$true] %s268_s1 }
  0x22   :  { %v475_v12 = vunpack.c.l.bf16 %v45_v5  ;;  %v477_v13 = vcvt.s32.f32 %v57_v6  ;;  %v479_v14 = vcvt.s32.f32 %v58_v7  ;;  %v481_v15 = vcvt.s32.f32 %v59_v8  ;;  %s386_s29 = scalar_lea.vmem %s269_s1, 768  ;;  %p391_p11 = scmp.lt.s32.totalorder %s269_s1, %s269_s1 }
  0x23   :  { %v72_v4 = vadd.s32 8, %v71_v1  ;;  %v483_v16 = vcvt.s32.f32 %v60_v9  ;;  %v485_v18 = vcvt.s32.f32 %v61_v10  ;;  %v487_v19 = vcvt.s32.f32 %v62_v11  ;;  %p387_p10 = scmp.ne.s32.totalorder %s269_s1, %s386_s29  ;;  %p392_p12 = scmp.lt.s32.totalorder %s386_s29, %s386_s29 }
  0x24   :  { %v489_v20 = vunpack.c.h.bf16 %v45_v5  ;;  %vm76_vm3 = vcmp.ne.f32.partialorder %v477_v13, -1.0  ;;  %vm77_vm4 = vcmp.ne.f32.partialorder %v479_v14, -1.0  ;;  %vm78_vm5 = vcmp.ne.f32.partialorder %v481_v15, -1.0 }
  0x25   :  { %vm83_vm2 = vcmp.lt.s32.totalorder %v72_v4, 12  ;;  %vm79_vm6 = vcmp.ne.f32.partialorder %v483_v16, -1.0  ;;  %vm80_vm7 = vcmp.ne.f32.partialorder %v485_v18, -1.0  ;;  %vm81_vm8 = vcmp.ne.f32.partialorder %v487_v19, -1.0  ;;  %p393_p13 = por %p392_p12, %p391_p11 }
  0x26   :  { %vm498_vm9 = vmand %vm79_vm6, %vm83_vm2  ;;  %v502_v22 = vunpack.c.l.bf16 %v46_v17  ;;  %v108_v23 = vand.u32 2147483647, %v475_v12  ;;  %vm204_vm11 = vcmask 355328   ;;  %v438_v25 = vmov 0  }
  0x27   :  { %vm506_vm10 = vmand %vm80_vm7, %vm83_vm2  ;;  %v206_v26 = vsel %vm76_vm3, 1, %v438_v25  ;;  %v208_v27 = vsel %vm78_vm5, 1, %v438_v25  ;;  %v209_v28 = vsel %vm498_vm9, 1, %v438_v25  ;;  %v207_v30 = vsel %vm77_vm4, 1, %v438_v25  ;;  %p394_p0 = pnand %p393_p13, %p387_p10 }
  0x28   :  { %vm517_vm12 = vmand %vm81_vm8, %vm83_vm2  ;;  %v210_v31 = vsel %vm506_vm10, 1, %v438_v25  ;;  %v212_v32 = vsel %vm200_vm0, %v208_v27, 0  ;;  %v214_v33 = vsel %vm213_vm1, %v209_v28, 0  ;;  %v109_v36 = vand.u32 2147483647, %v489_v20 }
  0x29   :  { %v211_v34 = vsel %vm517_vm12, 1, %v438_v25  ;;  %v215_v35 = vsel %vm213_vm1, %v210_v31, 0  ;;  %v110_v39 = vand.u32 2147483647, %v502_v22  ;;  %v114_v40 = vsub.f32 0.0, %v108_v23 }
  0x2a   :  { %v216_v37 = vadd.s32 %v215_v35, %v206_v26  ;;  %v217_v38 = vsel %vm204_vm11, %v211_v34, 0  ;;  %v220_v42 = vadd.s32 %v214_v33, %v212_v32  ;;  %v115_v43 = vsub.f32 0.0, %v109_v36 }
  0x2b   :  { %v218_v41 = vadd.s32 %v217_v38, %v207_v30  ;;  %v116_v45 = vsub.f32 0.0, %v110_v39  ;;  %v120_v46 = vmul.f32 1.442695, %v114_v40  ;;  %v533_v51 = vunpack.c.l.bf16 %v47_v44 }
  0x2c   :  { %v122_v49 = vmul.f32 1.442695, %v115_v43  ;;  %v535_v53 = vunpack.c.h.bf16 %v47_v44  ;;  %v537_v54 = vunpack.c.l.bf16 %v48_v47  ;;  %v96_v25 = vmul.f32 %v477_v13, %v475_v12 }
  0x2d   :  { %v219_v48 = vadd.s32 %v218_v41, %v216_v37  ;;  %322 = vpow2.f32 %v120_v46  ;;  %v124_v50 = vmul.f32 1.442695, %v116_v45  ;;  %v111_v57 = vand.u32 2147483647, %v533_v51 }
  0x2e   :  { %324 = vpow2.f32 %v122_v49  ;;  %v112_v59 = vand.u32 2147483647, %v535_v53  ;;  %v113_v60 = vand.u32 2147483647, %v537_v54  ;;  %v97_v27 = vmul.f32 %v479_v14, %v489_v20 }
  0x2f   :  { %v221_v52 = vadd.s32 %v220_v42, %v219_v48  ;;  %326 = vpow2.f32 %v124_v50  ;;  %v117_v61 = vsub.f32 0.0, %v111_v57  ;;  %v90_v28 = vmax.f32 %v475_v12, 0.0 }
  0x30   :  { %v118_v63 = vsub.f32 0.0, %v112_v59  ;;  %v119_v0 = vsub.f32 0.0, %v113_v60  ;;  %v91_v33 = vmax.f32 %v489_v20, 0.0  ;;  %v98_v40 = vmul.f32 %v481_v15, %v502_v22 }
  0x31   :  { %v223_v55 = vshrl.u32 %v221_v52, 16  ;;  %v222_v56 = vand.u32 65535, %v221_v52  ;;  %v126_v1 = vmul.f32 1.442695, %v117_v61  ;;  %v92_v12 = vmax.f32 %v502_v22, 0.0 }
  0x32   :  { %v128_v2 = vmul.f32 1.442695, %v118_v63  ;;  %v130_v3 = vmul.f32 1.442695, %v119_v0  ;;  %v102_v20 = vsub.f32 %v90_v28, %v96_v25  ;;  %v103_v44 = vsub.f32 %v91_v33, %v97_v27 }
  0x33   :  { %v225_v58 = vcvt.s32.f32 %v223_v55  ;;  %v224_v62 = vcvt.s32.f32 %v222_v56  ;;  %328 = vpow2.f32 %v126_v1  ;;  %v104_v55 = vsub.f32 %v92_v12, %v98_v40 }
  0x34   :  { %330 = vpow2.f32 %v128_v2  ;;  %v93_v59 = vmax.f32 %v533_v51, 0.0  ;;  %v94_v63 = vmax.f32 %v535_v53, 0.0  ;;  %v99_v0 = vmul.f32 %v483_v16, %v533_v51 }
  0x35   :  { %228 = vadd.xlane.f32.xlu0 %v225_v58  ;;  %332 = vpow2.f32 %v130_v3  ;;  %v100_v3 = vmul.f32 %v485_v18, %v535_v53  ;;  %v95_v18 = vmax.f32 %v537_v54, 0.0  ;;  %v101_v53 = vmul.f32 %v487_v19, %v537_v54 }
  0x36   :  { %v105_v13 = vsub.f32 %v93_v59, %v99_v0 }
  0x37   :  { %v106_v14 = vsub.f32 %v94_v63, %v100_v3 }
  0x39   :  { %226 = vadd.xlane.f32.xlu0 %v224_v62 }
  0x3a   :  { %v323_v4 = vpop.eup %322 }
  0x3b   :  { %v325_v5 = vpop.eup %324  ;;  %v132_v6 = vadd.f32 1.0, %v323_v4  ;;  %v135_v10 = vmul.f32 -0.5, %v323_v4  ;;  %v138_v34 = vand.u32 2147483647, %v323_v4 }
  0x3c   :  { %v327_v7 = vpop.eup %326  ;;  %v141_v8 = vadd.f32 1.0, %v325_v5  ;;  %v144_v11 = vmul.f32 -0.5, %v325_v5  ;;  %v147_v37 = vand.u32 2147483647, %v325_v5 }
  0x3d   :  { %334 = vlog2.f32 %v132_v6  ;;  %v150_v9 = vadd.f32 1.0, %v327_v7  ;;  %v153_v17 = vmul.f32 -0.5, %v327_v7  ;;  %v136_v30 = vadd.f32 1.0, %v135_v10 }
  0x3e   :  { %336 = vlog2.f32 %v141_v8  ;;  %v145_v35 = vadd.f32 1.0, %v144_v11  ;;  %v156_v41 = vand.u32 2147483647, %v327_v7  ;;  %vm560_vm13 = vcmp.lt.f32.partialorder %v138_v34, 0.0004427343 }
  0x3f   :  { %338 = vlog2.f32 %v150_v9  ;;  %v154_v38 = vadd.f32 1.0, %v153_v17  ;;  %v137_v42 = vmul.f32 %v323_v4, %v136_v30  ;;  %vm564_vm14 = vcmp.lt.f32.partialorder %v147_v37, 0.0004427343 }
  0x40   :  { %v542_v23 = vpop.eup %328  ;;  %v146_v46 = vmul.f32 %v325_v5, %v145_v35  ;;  %vm569_vm15 = vcmp.lt.f32.partialorder %v156_v41, 0.0004427343  ;;  %v107_v35 = vsub.f32 %v95_v18, %v101_v53 }
  0x41   :  { %v546_v26 = vpop.eup %330  ;;  %v159_v31 = vadd.f32 1.0, %v542_v23  ;;  %v155_v50 = vmul.f32 %v327_v7, %v154_v38  ;;  %v162_v22 = vmul.f32 -0.5, %v542_v23  ;;  %v165_v7 = vand.u32 2147483647, %v542_v23 }
  0x42   :  { %v552_v32 = vpop.eup %332  ;;  %v168_v36 = vadd.f32 1.0, %v546_v26  ;;  %v171_v58 = vmul.f32 -0.5, %v546_v26  ;;  %v174_v16 = vand.u32 2147483647, %v546_v26 }
  0x43   :  { %340 = vlog2.f32 %v159_v31  ;;  %v177_v39 = vadd.f32 1.0, %v552_v32  ;;  %v180_v62 = vmul.f32 -0.5, %v552_v32  ;;  %v163_v5 = vadd.f32 1.0, %v162_v22 }
  0x44   :  { %342 = vlog2.f32 %v168_v36  ;;  %v172_v8 = vadd.f32 1.0, %v171_v58  ;;  %v183_v17 = vand.u32 2147483647, %v552_v32  ;;  %vm166_vm2 = vcmp.lt.f32.partialorder %v165_v7, 0.0004427343 }
  0x45   :  { %344 = vlog2.f32 %v177_v39  ;;  %v181_v51 = vadd.f32 1.0, %v180_v62  ;;  %v164_v27 = vmul.f32 %v542_v23, %v163_v5 }
  0x46   :  { %v173_v30 = vmul.f32 %v546_v26, %v172_v8 }
  0x47   :  { %v182_v19 = vmul.f32 %v552_v32, %v181_v51 }
  0x4a   :  { %v335_v43 = vpop.eup %334 }
  0x4b   :  { %v337_v47 = vpop.eup %336  ;;  %v134_v48 = vmul.f32 0.6931472, %v335_v43 }
  0x4c   :  { %v339_v52 = vpop.eup %338  ;;  %v143_v56 = vmul.f32 0.6931472, %v337_v47 }
  0x4d   :  { %v140_v60 = vsel %vm560_vm13, %v137_v42, %v134_v48  ;;  %v152_v61 = vmul.f32 0.6931472, %v339_v52 }
  0x4e   :  { %v149_v1 = vsel %vm564_vm14, %v146_v46, %v143_v56  ;;  %v186_v2 = vadd.f32 %v140_v60, %v102_v20 }
  0x4f   :  { %v158_v4 = vsel %vm569_vm15, %v155_v50, %v152_v61  ;;  %v187_v6 = vadd.f32 %v149_v1, %v103_v44 }
  0x50   :  { %v188_v9 = vadd.f32 %v158_v4, %v104_v55  ;;  %v192_v10 = vsel %vm76_vm3, %v186_v2, 0.0  ;;  %v341_v28 = vpop.eup %340  ;;  %vm175_vm3 = vcmp.lt.f32.partialorder %v174_v16, 0.0004427343 }
  0x51   :  { %v193_v11 = vsel %vm77_vm4, %v187_v6, 0.0  ;;  %198 = vst [vmem:[#allocation8] sm:$0xff] %v192_v10  ;;  %v343_v33 = vpop.eup %342  ;;  %v161_v34 = vmul.f32 0.6931472, %v341_v28  ;;  %vm184_vm4 = vcmp.lt.f32.partialorder %v183_v17, 0.0004427343 }
  0x52   :  { %v194_v25 = vsel %vm78_vm5, %v188_v9, 0.0  ;;  %199 = vst [vmem:[#allocation8 + $0x8] sm:$0xff] %v193_v11  ;;  %v243_v31 = vadd.f32 %v193_v11, %v192_v10  ;;  %v345_v54 = vpop.eup %344  ;;  %v170_v36 = vmul.f32 0.6931472, %v343_v33 }
  0x53   :  { %201 = vst.msk [vmem:[#allocation8 + $0x10] sm:$0xff] %vm200_vm0, %v194_v25  ;;  %v244_v15 = vsel %vm200_vm0, %v194_v25, 0.0  ;;  %v167_v23 = vsel %vm166_vm2, %v164_v27, %v161_v34  ;;  %v179_v37 = vmul.f32 0.6931472, %v345_v54 }
  0x54   :  { %v176_v38 = vsel %vm175_vm3, %v173_v30, %v170_v36  ;;  %v189_v39 = vadd.f32 %v167_v23, %v105_v13  ;;  %v245_v40 = vadd.f32 %v244_v15, %v243_v31 }
  0x55   :  { %v185_v12 = vsel %vm184_vm4, %v182_v19, %v179_v37  ;;  %v190_v41 = vadd.f32 %v176_v38, %v106_v14 }
  0x56   :  { %v191_v26 = vadd.f32 %v185_v12, %v107_v35  ;;  %v195_v42 = vsel %vm498_vm9, %v189_v39, 0.0 }
  0x57   :  { %v196_v32 = vsel %vm506_vm10, %v190_v41, 0.0  ;;  %202 = vst [vmem:[#allocation8 + $0x18] sm:$0xf] %v195_v42  ;;  %v246_v43 = vsel %vm213_vm1, %v195_v42, 0.0 }
  0x58   :  { %v197_v20 = vsel %vm517_vm12, %v191_v26, 0.0  ;;  %203 = vst [vmem:[#allocation8 + $0x20] sm:$0xf] %v196_v32  ;;  %v247_v44 = vadd.f32 %v246_v43, %v245_v40  ;;  %v248_v45 = vsel %vm213_vm1, %v196_v32, 0.0 }
  0x59   :  { %205 = vst.msk [vmem:[#allocation8 + $0x28] sm:$0xf] %vm204_vm11, %v197_v20  ;;  %v250_v46 = vsel %vm204_vm11, %v197_v20, 0.0 }
  0x5a   :  { %v249_v47 = vadd.f32 %v248_v45, %v247_v44 }
  0x5c   :  { %v251_v21 = vadd.f32 %v250_v46, %v249_v47 }
  0x5e   :  { %252 = vadd.xlane.f32.xlu1 %v251_v21 }
  0x5f   :  { %397 = shalt.err (!%p394_p0)
}
  0x60   :  { %s440_s30 = smov 384   ;;  %s441_s5 = smov 24  }
  0x61   :  { %274 = dma.vmem_to_hbm [thread:$0]  %s269_s1, 768, %s625_s2, [#allocation4], %s440_s30, %s440_s30, %s441_s5  }
  0x62   :  { %s442_s8 = smov [#allocation9]   ;;  %s443_s12 = smov [#allocation10]  }
  0xbe   :  { %v229_v24 = vpop.xlane.xlu0 %228 }
  0xbf   :  { %v231_v29 = vcvt.f32.s32 %v229_v24 }
  0xc1   :  { %v232_v48 = vshll.u32 %v231_v29, 16 }
  0xc2   :  { %v227_v49 = vpop.xlane.xlu0 %226 }
  0xc3   :  { %v230_v50 = vcvt.f32.s32 %v227_v49 }
  0xc5   :  { %v233_v22 = vadd.s32 %v232_v48, %v230_v50 }
  0xc7   :  { %v234_v52 = vrot.slane %v233_v22, 4 }
  0xc9   :  { %v235_v55 = vadd.s32 %v234_v52, %v233_v22 }
  0xcb   :  { %v236_v56 = vrot.slane %v235_v55, 2 }
  0xcd   :  { %v237_v57 = vadd.s32 %v236_v56, %v235_v55 }
  0xcf   :  { %v238_v58 = vrot.slane %v237_v57, 1 }
  0xd1   :  { %v239_v59 = vadd.s32 %v238_v58, %v237_v57 }
  0xd3   :  { %306 = vpush %v239_v59 }
  0xe7   :  { %v253_v60 = vpop.xlane.xlu1 %252 }
  0xe8   :  { %v254_v61 = vrot.slane %v253_v60, 4 }
  0xea   :  { %v255_v62 = vadd.f32 %v254_v61, %v253_v60 }
  0xec   :  { %v256_v63 = vrot.slane %v255_v62, 2 }
  0xee   :  { %v257_v0 = vadd.f32 %v256_v63, %v255_v62 }
  0xf0   :  { %v258_v1 = vrot.slane %v257_v0, 1 }
  0xf2   :  { %v259_v2 = vadd.f32 %v258_v1, %v257_v0 }
  0xf4   :  { %308 = vpush %v259_v2 }
 0x104   :  { %s307_s2 = spop %306 }
 0x105   :  { %242 = sst [smem:[#allocation9]] %s307_s2 }
 0x106   :  { %282 = dma.smem_to_hbm %s442_s8, 16, %s626_s3, [#allocation5]  }
 0x125   :  { %s309_s11 = spop %308 }
 0x126   :  { %262 = sst [smem:[#allocation10]] %s309_s11 }
 0x127   :  { %290 = dma.smem_to_hbm %s443_s12, 16, %s627_s4, [#allocation11]  }
 0x128   :  { %426 = dma.done.wait [#allocation4], 768  }
 0x129   :  { %427 = vsyncadd [#allocation4], 4294966528 }
 0x12a   :  { %428 = dma.done.wait [#allocation5], 16  }
 0x12b   :  { %429 = vsyncadd [#allocation5], 4294967280 }
 0x12c   :  { %430 = dma.done.wait [#allocation11], 16  }
 0x12d   :  { %431 = vsyncadd [#allocation11], 4294967280 }
 0x12e   :  { %300 = sfence }
 0x12f   :  { %301 = vsyncpa [#allocation3], 1 }
 0x130   :  { %302 = vsyncpa [#allocation7], 1 }
 0x131   :  { %303 = vsyncpa [#allocation4], 1 }
 0x132   :  { %304 = vsyncpa [#allocation5], 1 }
 0x133   :  { %305 = vsyncpa [#allocation11], 1 }

</bundles_post_ra>
